<compile_context>
chip_gen: v5e
topology: v5e:2x2
jax: 0.10.0
libtpu: 0.0.40
codegen_flags: <defaults>
</compile_context>

<pallas_src>
import functools

import jax
import jax.numpy as jnp
from jax.experimental import pallas as pl
from jax.experimental.pallas import tpu as pltpu

C_IN = 3      # input channels
C1 = 16       # conv1 output channels (and BN channels)
C2 = 3        # conv2 output channels
C_CAT = C1 + C2
C_OUT = 3     # conv3 output channels
BN_EPS = 1e-5
X_SHIFT = 128.0          # accumulate moments of (x - 128) to reduce cancellation
LANE_CAP = 64 * 1024     # max lanes per tile (few MiB of VMEM -> safe incl. v7x)


# ---------------------------------------------------------------------------
# Kernels (per-image channel-major tiles: rows = channels, cols = pixels)
# ---------------------------------------------------------------------------
def _stats_kernel(x_ref, mom_ref, *, n_tiles, tail):
    """Raw-x sufficient statistics (shifted by -128), accumulated over pixel tiles.

    mom_ref block: (C_IN, C_IN + 1) = [ sum(xs xs^T) | sum(xs) ] for this image."""
    t = pl.program_id(1)

    @pl.when(t == 0)
    def _():
        mom_ref[...] = jnp.zeros_like(mom_ref)

    xs = x_ref[...].astype(jnp.float32) - X_SHIFT          # (C_IN, tm)

    if tail is not None:  # static: grid does not divide H*W -> mask ragged last tile
        tm = xs.shape[1]
        lane = jax.lax.broadcasted_iota(jnp.int32, xs.shape, 1)
        limit = jnp.where(t == n_tiles - 1, tail, tm)
        xs = jnp.where(lane < limit, xs, 0.0)

    cols = [jnp.sum(xs * xs[j:j + 1, :], axis=1, keepdims=True) for j in range(C_IN)]
    cols.append(jnp.sum(xs, axis=1, keepdims=True))
    mom_ref[...] += jnp.concatenate(cols, axis=1)          # (C_IN, C_IN + 1)


def _apply_kernel(x_ref, a_ref, b_ref, out_ref):
    """Fully folded forward: out = A @ x + b (channel-major, lane-dense)."""
    x = x_ref[...].astype(jnp.float32)                     # (C_IN, tm)
    a = a_ref[...]                                         # (C_OUT, C_IN)
    acc = a[:, 0:1] * x[0:1, :]
    for j in range(1, C_IN):
        acc = acc + a[:, j:j + 1] * x[j:j + 1, :]
    out_ref[...] = acc + b_ref[...]                        # (C_OUT, tm)


# ---------------------------------------------------------------------------
# Wrapper
# ---------------------------------------------------------------------------
def _choose_tiles(hw):
    """Single tile whenever the pixel axis fits; otherwise 64K-lane tiles."""
    if hw <= LANE_CAP:
        return hw, 1
    return LANE_CAP, -(-hw // LANE_CAP)


@jax.jit
def run_model(x_nchw, params):
    """x_nchw: (N, 3, H, W) int/float.  Returns (N, 3, H, W) float32."""
    n, c, h, w = x_nchw.shape
    assert c == C_IN
    hw = h * w
    m_total = n * hw

    x3 = x_nchw.reshape(n, C_IN, hw)          # free reshape: no transpose/pad/cast

    tm, n_tiles = _choose_tiles(hw)
    rem = hw - (n_tiles - 1) * tm
    tail = rem if (n_tiles > 1 and rem != tm) else None

    # ---- pass 1: raw-x moments (per image -> batch axis is megacore-parallel) ----
    stats_kernel = functools.partial(_stats_kernel, n_tiles=n_tiles, tail=tail)
    mom = pl.pallas_call(
        stats_kernel,
        grid=(n, n_tiles),
        in_specs=[pl.BlockSpec((None, C_IN, tm), lambda b, t: (b, 0, t))],
        out_specs=pl.BlockSpec((None, C_IN, C_IN + 1), lambda b, t: (b, 0, 0)),
        out_shape=jax.ShapeDtypeStruct((n, C_IN, C_IN + 1), jnp.float32),
        compiler_params=pltpu.CompilerParams(
            dimension_semantics=("parallel", "arbitrary")),
    )(x3)
    mom = jnp.sum(mom, axis=0)                              # (C_IN, C_IN + 1)

    # ---- host-side fold of conv1 + BN + conv2 + cat + conv3 + (+3) into (A, b) ----
    w1, w2, w3, b3 = params["w1"], params["w2"], params["w3"], params["b3"]
    gamma, beta = params["gamma"], params["beta"]

    sum_xx = mom[:, :C_IN]                                  # shifted second moments
    sum_x = mom[:, C_IN]                                    # shifted first moments
    mean_s = sum_x / m_total
    mean_x = mean_s + X_SHIFT                               # (3,)
    cov = sum_xx / m_total - jnp.outer(mean_s, mean_s)      # (3,3), shift-invariant

    mean1 = mean_x @ w1                                     # (16,)  mean of conv1(x)
    var1 = jnp.maximum(jnp.sum(w1 * (cov @ w1), axis=0), 0.0)   # (16,) var of conv1(x)
    scale = gamma * jax.lax.rsqrt(var1 + BN_EPS)            # (16,)
    shift = beta - mean1 * scale                            # (16,)

    w3a, w3b = w3[:C1], w3[C1:]                             # (16,3), (3,3)
    w23 = w2 @ w3b                                          # (16,3)
    a_pm = w1 @ (w3a + scale[:, None] * w23)                # (3,3): y_pm = x_pm @ a_pm
    a_cm = a_pm.T                                           # (3,3): out = a_cm @ x_cm
    b_fold = (shift @ w23 + b3 + 3.0).reshape(C_OUT, 1)     # (3,1)

    # ---- pass 2: fully-folded apply (HBM-bound 3-row stream, fully parallel) ----
    out3 = pl.pallas_call(
        _apply_kernel,
        grid=(n, n_tiles),
        in_specs=[pl.BlockSpec((None, C_IN, tm), lambda b, t: (b, 0, t)),
                  pl.BlockSpec((C_OUT, C_IN), lambda b, t: (0, 0)),
                  pl.BlockSpec((C_OUT, 1), lambda b, t: (0, 0))],
        out_specs=pl.BlockSpec((None, C_OUT, tm), lambda b, t: (b, 0, t)),
        out_shape=jax.ShapeDtypeStruct((n, C_OUT, hw), jnp.float32),
        compiler_params=pltpu.CompilerParams(
            dimension_semantics=("parallel", "parallel")),
    )(x3, a_cm, b_fold)

    return out3.reshape(n, C_OUT, h, w)


# ---------------------------------------------------------------------------
# Params / reference / test
# ---------------------------------------------------------------------------
def init_params(key):
    k1, k2, k3, k4 = jax.random.split(key, 4)
    # conv weights stored as (Cin, Cout) matmul matrices (PyTorch stores (Cout,Cin,1,1))
    w1 = jax.random.normal(k1, (C_IN, C1), jnp.float32) * 0.1
    w2 = jax.random.normal(k2, (C1, C2), jnp.float32) * 0.1
    w3 = jax.random.normal(k3, (C_CAT, C_OUT), jnp.float32) * 0.1
    b3 = jax.random.normal(k4, (C_OUT,), jnp.float32) * 0.1
    gamma = jnp.ones((C1,), jnp.float32)   # BN default affine init
    beta = jnp.zeros((C1,), jnp.float32)
    return {"w1": w1, "w2": w2, "w3": w3, "b3": b3, "gamma": gamma, "beta": beta}


def reference(x_nchw, params):
    """Pure-JAX (un-folded, two-pass BN) reference for a sanity check."""
    n, _, h, w = x_nchw.shape
    x = jnp.transpose(x_nchw.astype(jnp.float32), (0, 2, 3, 1)).reshape(-1, C_IN)
    x1 = x @ params["w1"]
    mean = jnp.mean(x1, axis=0)
    var = jnp.mean((x1 - mean) ** 2, axis=0)
    xbn = (x1 - mean) / jnp.sqrt(var + BN_EPS) * params["gamma"] + params["beta"]
    x2 = xbn @ params["w2"]
    v = jnp.concatenate([x1, x2], axis=-1)
    y = v @ params["w3"] + params["b3"]
    y3 = y + 3.0
    return jnp.transpose(y3.reshape(n, h, w, C_OUT), (0, 3, 1, 2))


if __name__ == "__main__":
    key = jax.random.PRNGKey(0)
    k_x, k_p = jax.random.split(key)

    # Small-shape analogue of torch.randint(0, 256, (1, 3, 64, 64)):
    x = jax.random.randint(k_x, (2, 3, 32, 32), 0, 256, dtype=jnp.int32)
    params = init_params(k_p)

    out = jax.block_until_ready(run_model(x, params))
    ref = reference(x, params)

    assert out.shape == (2, C_OUT, 32, 32), out.shape
    err = float(jnp.max(jnp.abs(out - ref)))
    assert jnp.allclose(out, ref, atol=1e-2, rtol=1e-3), f"mismatch vs reference, max |err|={err}"

    print("KERNEL_OK")
</pallas_src>

<mosaic_0001>
module attributes {stable_mosaic.version = 11 : i64} {
  func.func @_stats_kernel(%arg0: i32, %arg1: i32, %arg2: memref<1x3x1024xi32, #tpu.memory_space<vmem>>, %arg3: memref<1x3x4xf32, #tpu.memory_space<vmem>>) attributes {dimension_semantics = [#tpu.dimension_semantics<parallel>, #tpu.dimension_semantics<arbitrary>], iteration_bounds = array<i64: 2, 1>, scalar_prefetch = 0 : i64, scratch_operands = 0 : i64, tpu.core_type = #tpu.core_type<tc>, window_params = [{transform_indices = @transform_0, window_bounds = array<i64: 1, 3, 1024>}, {transform_indices = @transform_1, window_bounds = array<i64: 1, 3, 4>}]} {
    %c0_i32 = arith.constant 0 : i32
    %0 = arith.cmpi eq, %arg1, %c0_i32 : i32
    %1 = arith.extui %0 : i1 to i32
    %c0_i32_0 = arith.constant 0 : i32
    %2 = arith.cmpi ne, %1, %c0_i32_0 : i32
    scf.if %2 {
      %cst_13 = arith.constant 0.000000e+00 : f32
      %32 = vector.broadcast %cst_13 : f32 to vector<3x4xf32>
      %c0_14 = arith.constant 0 : index
      %c0_15 = arith.constant 0 : index
      %c0_16 = arith.constant 0 : index
      %33 = vector.load %arg3[%c0_14, %c0_15, %c0_16] : memref<1x3x4xf32, #tpu.memory_space<vmem>>, vector<1x3x4xf32>
      %34 = vector.shape_cast %33 : vector<1x3x4xf32> to vector<3x4xf32>
      %35 = vector.shape_cast %32 : vector<3x4xf32> to vector<1x3x4xf32>
      tpu.vector_store %arg3[%c0_14, %c0_15, %c0_16], %35 {strides = array<i32>} : memref<1x3x4xf32, #tpu.memory_space<vmem>>, vector<1x3x4xf32>,
    } else {
    }
    %c0 = arith.constant 0 : index
    %c0_1 = arith.constant 0 : index
    %c0_2 = arith.constant 0 : index
    %3 = vector.load %arg2[%c0, %c0_1, %c0_2] : memref<1x3x1024xi32, #tpu.memory_space<vmem>>, vector<1x3x1024xi32>
    %4 = vector.shape_cast %3 : vector<1x3x1024xi32> to vector<3x1024xi32>
    %5 = arith.sitofp %4 : vector<3x1024xi32> to vector<3x1024xf32>
    %cst = arith.constant 1.280000e+02 : f32
    %6 = vector.broadcast %cst : f32 to vector<3x1024xf32>
    %7 = arith.subf %5, %6 : vector<3x1024xf32>
    %8 = vector.extract_strided_slice %7 {offsets = [0, 0], sizes = [1, 1024], strides = [1, 1]} : vector<3x1024xf32> to vector<1x1024xf32>
    %9 = vector.broadcast %8 : vector<1x1024xf32> to vector<3x1024xf32>
    %10 = arith.mulf %7, %9 : vector<3x1024xf32>
    %cst_3 = arith.constant dense<0.000000e+00> : vector<3xf32>
    %11 = vector.multi_reduction <add>, %10, %cst_3 [1] : vector<3x1024xf32> to vector<3xf32>
    %12 = vector.shape_cast %11 : vector<3xf32> to vector<3x1xf32>
    %13 = vector.extract_strided_slice %7 {offsets = [1, 0], sizes = [1, 1024], strides = [1, 1]} : vector<3x1024xf32> to vector<1x1024xf32>
    %14 = vector.broadcast %13 : vector<1x1024xf32> to vector<3x1024xf32>
    %15 = arith.mulf %7, %14 : vector<3x1024xf32>
    %cst_4 = arith.constant dense<0.000000e+00> : vector<3xf32>
    %16 = vector.multi_reduction <add>, %15, %cst_4 [1] : vector<3x1024xf32> to vector<3xf32>
    %17 = vector.shape_cast %16 : vector<3xf32> to vector<3x1xf32>
    %18 = vector.extract_strided_slice %7 {offsets = [2, 0], sizes = [1, 1024], strides = [1, 1]} : vector<3x1024xf32> to vector<1x1024xf32>
    %19 = vector.broadcast %18 : vector<1x1024xf32> to vector<3x1024xf32>
    %20 = arith.mulf %7, %19 : vector<3x1024xf32>
    %cst_5 = arith.constant dense<0.000000e+00> : vector<3xf32>
    %21 = vector.multi_reduction <add>, %20, %cst_5 [1] : vector<3x1024xf32> to vector<3xf32>
    %22 = vector.shape_cast %21 : vector<3xf32> to vector<3x1xf32>
    %cst_6 = arith.constant dense<0.000000e+00> : vector<3xf32>
    %23 = vector.multi_reduction <add>, %7, %cst_6 [1] : vector<3x1024xf32> to vector<3xf32>
    %24 = vector.shape_cast %23 : vector<3xf32> to vector<3x1xf32>
    %c0_7 = arith.constant 0 : index
    %c0_8 = arith.constant 0 : index
    %c0_9 = arith.constant 0 : index
    %25 = vector.load %arg3[%c0_7, %c0_8, %c0_9] : memref<1x3x4xf32, #tpu.memory_space<vmem>>, vector<1x3x4xf32>
    %26 = vector.shape_cast %25 : vector<1x3x4xf32> to vector<3x4xf32>
    %27 = tpu.concatenate %12, %17, %22, %24 in 1 : vector<3x1xf32>, vector<3x1xf32>, vector<3x1xf32>, vector<3x1xf32> -> vector<3x4xf32>
    %28 = arith.addf %26, %27 : vector<3x4xf32>
    %c0_10 = arith.constant 0 : index
    %c0_11 = arith.constant 0 : index
    %c0_12 = arith.constant 0 : index
    %29 = vector.load %arg3[%c0_10, %c0_11, %c0_12] : memref<1x3x4xf32, #tpu.memory_space<vmem>>, vector<1x3x4xf32>
    %30 = vector.shape_cast %29 : vector<1x3x4xf32> to vector<3x4xf32>
    %31 = vector.shape_cast %28 : vector<3x4xf32> to vector<1x3x4xf32>
    tpu.vector_store %arg3[%c0_10, %c0_11, %c0_12], %31 {strides = array<i32>} : memref<1x3x4xf32, #tpu.memory_space<vmem>>, vector<1x3x4xf32>,
    return
  }
  func.func @transform_0(%arg0: i32, %arg1: i32) -> (i32, i32, i32) {
    %c0_i32 = arith.constant 0 : i32
    %c0_i32_0 = arith.constant 0 : i32
    return %arg0, %c0_i32, %arg1 : i32, i32, i32
  }
  func.func @transform_1(%arg0: i32, %arg1: i32) -> (i32, i32, i32) {
    %c0_i32 = arith.constant 0 : i32
    %c0_i32_0 = arith.constant 0 : i32
    %c0_i32_1 = arith.constant 0 : i32
    return %arg0, %c0_i32, %c0_i32_0 : i32, i32, i32
  }
}

module attributes {stable_mosaic.version = 11 : i64} {
  func.func @_apply_kernel(%arg0: i32, %arg1: i32, %arg2: memref<1x3x1024xi32, #tpu.memory_space<vmem>>, %arg3: memref<3x3xf32, #tpu.memory_space<vmem>>, %arg4: memref<3x1xf32, #tpu.memory_space<vmem>>, %arg5: memref<1x3x1024xf32, #tpu.memory_space<vmem>>) attributes {dimension_semantics = [#tpu.dimension_semantics<parallel>, #tpu.dimension_semantics<parallel>], iteration_bounds = array<i64: 2, 1>, scalar_prefetch = 0 : i64, scratch_operands = 0 : i64, tpu.core_type = #tpu.core_type<tc>, window_params = [{transform_indices = @transform_0, window_bounds = array<i64: 1, 3, 1024>}, {pipeline_mode = #tpu.pipeline_mode<synchronous>, transform_indices = @transform_1, window_bounds = array<i64: 3, 3>}, {pipeline_mode = #tpu.pipeline_mode<synchronous>, transform_indices = @transform_2, window_bounds = array<i64: 3, 1>}, {transform_indices = @transform_3, window_bounds = array<i64: 1, 3, 1024>}]} {
    %c0 = arith.constant 0 : index
    %c0_0 = arith.constant 0 : index
    %c0_1 = arith.constant 0 : index
    %0 = vector.load %arg2[%c0, %c0_0, %c0_1] : memref<1x3x1024xi32, #tpu.memory_space<vmem>>, vector<1x3x1024xi32>
    %1 = vector.shape_cast %0 : vector<1x3x1024xi32> to vector<3x1024xi32>
    %2 = arith.sitofp %1 : vector<3x1024xi32> to vector<3x1024xf32>
    %c0_2 = arith.constant 0 : index
    %c0_3 = arith.constant 0 : index
    %3 = vector.load %arg3[%c0_2, %c0_3] : memref<3x3xf32, #tpu.memory_space<vmem>>, vector<3x3xf32>
    %4 = vector.extract_strided_slice %3 {offsets = [0, 0], sizes = [3, 1], strides = [1, 1]} : vector<3x3xf32> to vector<3x1xf32>
    %5 = vector.extract_strided_slice %2 {offsets = [0, 0], sizes = [1, 1024], strides = [1, 1]} : vector<3x1024xf32> to vector<1x1024xf32>
    %6 = vector.broadcast %4 : vector<3x1xf32> to vector<3x1024xf32>
    %7 = vector.broadcast %5 : vector<1x1024xf32> to vector<3x1024xf32>
    %8 = arith.mulf %6, %7 : vector<3x1024xf32>
    %9 = vector.extract_strided_slice %3 {offsets = [0, 1], sizes = [3, 1], strides = [1, 1]} : vector<3x3xf32> to vector<3x1xf32>
    %10 = vector.extract_strided_slice %2 {offsets = [1, 0], sizes = [1, 1024], strides = [1, 1]} : vector<3x1024xf32> to vector<1x1024xf32>
    %11 = vector.broadcast %9 : vector<3x1xf32> to vector<3x1024xf32>
    %12 = vector.broadcast %10 : vector<1x1024xf32> to vector<3x1024xf32>
    %13 = arith.mulf %11, %12 : vector<3x1024xf32>
    %14 = arith.addf %8, %13 : vector<3x1024xf32>
    %15 = vector.extract_strided_slice %3 {offsets = [0, 2], sizes = [3, 1], strides = [1, 1]} : vector<3x3xf32> to vector<3x1xf32>
    %16 = vector.extract_strided_slice %2 {offsets = [2, 0], sizes = [1, 1024], strides = [1, 1]} : vector<3x1024xf32> to vector<1x1024xf32>
    %17 = vector.broadcast %15 : vector<3x1xf32> to vector<3x1024xf32>
    %18 = vector.broadcast %16 : vector<1x1024xf32> to vector<3x1024xf32>
    %19 = arith.mulf %17, %18 : vector<3x1024xf32>
    %20 = arith.addf %14, %19 : vector<3x1024xf32>
    %c0_4 = arith.constant 0 : index
    %c0_5 = arith.constant 0 : index
    %21 = vector.load %arg4[%c0_4, %c0_5] : memref<3x1xf32, #tpu.memory_space<vmem>>, vector<3x1xf32>
    %22 = vector.broadcast %21 : vector<3x1xf32> to vector<3x1024xf32>
    %23 = arith.addf %20, %22 : vector<3x1024xf32>
    %c0_6 = arith.constant 0 : index
    %c0_7 = arith.constant 0 : index
    %c0_8 = arith.constant 0 : index
    %24 = vector.load %arg5[%c0_6, %c0_7, %c0_8] : memref<1x3x1024xf32, #tpu.memory_space<vmem>>, vector<1x3x1024xf32>
    %25 = vector.shape_cast %24 : vector<1x3x1024xf32> to vector<3x1024xf32>
    %26 = vector.shape_cast %23 : vector<3x1024xf32> to vector<1x3x1024xf32>
    tpu.vector_store %arg5[%c0_6, %c0_7, %c0_8], %26 {strides = array<i32>} : memref<1x3x1024xf32, #tpu.memory_space<vmem>>, vector<1x3x1024xf32>,
    return
  }
  func.func @transform_0(%arg0: i32, %arg1: i32) -> (i32, i32, i32) {
    %c0_i32 = arith.constant 0 : i32
    %c0_i32_0 = arith.constant 0 : i32
    return %arg0, %c0_i32, %arg1 : i32, i32, i32
  }
  func.func @transform_1(%arg0: i32, %arg1: i32) -> (i32, i32) {
    %c0_i32 = arith.constant 0 : i32
    %c0_i32_0 = arith.constant 0 : i32
    %c0_i32_1 = arith.constant 0 : i32
    return %c0_i32, %c0_i32_0 : i32, i32
  }
  func.func @transform_2(%arg0: i32, %arg1: i32) -> (i32, i32) {
    %c0_i32 = arith.constant 0 : i32
    %c0_i32_0 = arith.constant 0 : i32
    %c0_i32_1 = arith.constant 0 : i32
    return %c0_i32, %c0_i32_0 : i32, i32
  }
  func.func @transform_3(%arg0: i32, %arg1: i32) -> (i32, i32, i32) {
    %c0_i32 = arith.constant 0 : i32
    %c0_i32_0 = arith.constant 0 : i32
    return %arg0, %c0_i32, %arg1 : i32, i32, i32
  }
}

</mosaic_0001>

<bundles_post_ra>
// kernel: run_model.3
= control target key start
LH: loop header
LB: loop body
LE: loop exit
PB: predicated region body
PF: predicated region fallthrough
CT: control target
= control target key end

     0   :  { %s566_s12 = smov 0   ;;  %s568_s13 = smov 0   ;;  %s612_s0 = inlined_call_operand.vmem [shape: s32[2,3,1024], index: 0, kind: input, shape index: {}]   ;;  %s613_s1 = inlined_call_operand.vmem [shape: f32[3,3], index: 1, kind: input, shape index: {}]   ;;  %s614_s2 = inlined_call_operand.vmem [shape: f32[3,1], index: 2, kind: input, shape index: {}]   ;;  %s615_s3 = inlined_call_operand.vmem [shape: f32[2,3,1024], index: 3, kind: output, shape index: {}]  }
   0x1   :  { %s570_s14 = smov 0  }
   0x2 LB: > { %s25_s15 = sadd.s32 1, %s537_s13  ;;  %p478_p0 = scmp.ge.s32.totalorder %s541_s14, 1  ;;  %s541_s14 = sphi %s570_s14, %s13_s14   ;;  %s537_s13 = sphi %s568_s13, %s617_s13   ;;  %s533_s12 = sphi %s566_s12, %s616_s12  }
   0x3   : > { %p27_p1 = scmp.ge.s32.totalorder %s25_s15, 2  ;;  %p158_p2 = scmp.lt.s32.totalorder %s541_s14, 3 }
   0x5   : > { %s619_s15 = smov (%p27_p1, %s25_s15), 0  ;;  %p159_p3 = pnand %p478_p0, %p158_p2 }
   0x6   : > { %p191_p4 = scmp.lt.s32.totalorder (!%p159_p3), %s533_s12, 1 }
   0x7   : > { %162 = sbr.rel (%p159_p3) target bundleno = 153 (0x99), region = 32 }
   0xc   : > { %v218_v0 = vld [vmem:[%s613_s1] sm:$0x7]  ;;  %v543_v1 = vmov 0   ;;  %v544_v2 = vmov 2   ;;  %v545_v4 = vmov 1   ;;  %s621_s12 = smov (!%p191_p4, %s533_s12), 1 }
   0xd   : > { %514 = vset.pattern.permute.xlu0 %v543_v1  ;;  %516 = vset.pattern.permute.xlu1 %v544_v2  ;;  %v348_v3 = vld [vmem:[%s614_s2] sm:$0x7]  ;;  %s485_s20 = sshll.u32 %s621_s12, 5  ;;  %vm374_vm0 = vcmask 1043456  }
   0xe   : > { %221 = vperm.xlu0 %514, %v218_v0   ;;  %305 = vperm.xlu1 %516, %v218_v0   ;;  %s198_s23 = scalar_lea.vmem %s612_s0, %s485_s20  ;;  %s208_s26 = scalar_lea.vmem %s615_s3, %s485_s20 }
   0xf   : > { %v210_v5 = vld [vmem:[%s198_s23] sm:$0x77]  ;;  %v211_v6 = vld [vmem:[%s198_s23 + $0x8] sm:$0x77]  ;;  %v212_v7 = vld [vmem:[%s198_s23 + $0x10] sm:$0x77] }
  0x10   : > { %v213_v8 = vld [vmem:[%s198_s23 + $0x18] sm:$0x77]  ;;  %v214_v9 = vcvt.s32.f32 %v210_v5  ;;  %v215_v10 = vcvt.s32.f32 %v211_v6  ;;  %v216_v11 = vcvt.s32.f32 %v212_v7 }
  0x11   : > { %v217_v12 = vcvt.s32.f32 %v213_v8 }
  0x12   : > { %v228_v13 = vperm.slane %v214_v9, 0  ;;  %v229_v14 = vperm.slane %v214_v9, 4  ;;  %v230_v15 = vperm.slane %v215_v10, 0  ;;  %v231_v16 = vperm.slane %v215_v10, 4 }
  0x13   : > { %v232_v17 = vperm.slane %v216_v11, 0  ;;  %v233_v18 = vperm.slane %v216_v11, 4  ;;  %v234_v19 = vperm.slane %v217_v12, 0  ;;  %v235_v20 = vperm.slane %v217_v12, 4 }
  0x14   : > { %v244_v21 = vperm.slane %v228_v13, 0  ;;  %v245_v22 = vperm.slane %v229_v14, 0  ;;  %v246_v23 = vperm.slane %v230_v15, 0  ;;  %v247_v24 = vperm.slane %v231_v16, 0 }
  0x15   : > { %v248_v25 = vperm.slane %v232_v17, 0  ;;  %v249_v26 = vperm.slane %v233_v18, 0  ;;  %v250_v27 = vperm.slane %v234_v19, 0  ;;  %v251_v28 = vperm.slane %v235_v20, 0 }
  0x16   : > { %515 = vset.pattern.permute.xlu0 %v545_v4  ;;  %517 = vset.pattern.permute.xlu1 %v543_v1  ;;  %v308_v29 = vperm.slane %v214_v9, 2  ;;  %v309_v30 = vperm.slane %v214_v9, 6  ;;  %v310_v31 = vperm.slane %v215_v10, 2  ;;  %v311_v32 = vperm.slane %v215_v10, 6 }
  0x17   : > { %261 = vperm.xlu0 %515, %v218_v0   ;;  %351 = vperm.xlu1 %517, %v348_v3   ;;  %v264_v33 = vperm.slane %v214_v9, 1  ;;  %v265_v34 = vperm.slane %v214_v9, 5  ;;  %v266_v35 = vperm.slane %v215_v10, 1  ;;  %v267_v36 = vperm.slane %v215_v10, 5 }
  0x18   : > { %v268_v38 = vperm.slane %v216_v11, 1  ;;  %v269_v39 = vperm.slane %v216_v11, 5  ;;  %v270_v40 = vperm.slane %v217_v12, 1  ;;  %v271_v41 = vperm.slane %v217_v12, 5 }
  0x19   : > { %v312_v42 = vperm.slane %v216_v11, 2  ;;  %v313_v43 = vperm.slane %v216_v11, 6  ;;  %v314_v44 = vperm.slane %v217_v12, 2  ;;  %v315_v45 = vperm.slane %v217_v12, 6 }
  0x1a   : > { %v324_v46 = vperm.slane %v308_v29, 2  ;;  %v325_v47 = vperm.slane %v309_v30, 2  ;;  %v326_v48 = vperm.slane %v310_v31, 2  ;;  %v327_v49 = vperm.slane %v311_v32, 2 }
  0x1b   : > { %v280_v51 = vperm.slane %v264_v33, 1  ;;  %v281_v52 = vperm.slane %v265_v34, 1  ;;  %v282_v53 = vperm.slane %v266_v35, 1  ;;  %v283_v54 = vperm.slane %v267_v36, 1 }
  0x1c   : > { %v284_v55 = vperm.slane %v268_v38, 1  ;;  %v285_v56 = vperm.slane %v269_v39, 1  ;;  %v286_v57 = vperm.slane %v270_v40, 1  ;;  %v287_v58 = vperm.slane %v271_v41, 1 }
  0x1d   : > { %v328_v59 = vperm.slane %v312_v42, 2  ;;  %v329_v60 = vperm.slane %v313_v43, 2  ;;  %v330_v61 = vperm.slane %v314_v44, 2  ;;  %v331_v62 = vperm.slane %v315_v45, 2 }
  0x1f   : > { %518 = vset.pattern.permute.xlu0 %v543_v1 }
  0x80   : > { %v222_v37 = vpop.permute.xlu0 %221  ;;  %v306_v50 = vpop.permute.xlu1 %305 }
  0x81   : > { %v252_v63 = vmul.f32 %v244_v21, %v222_v37  ;;  %v253_v0 = vmul.f32 %v245_v22, %v222_v37  ;;  %v254_v1 = vmul.f32 %v246_v23, %v222_v37  ;;  %v255_v2 = vmul.f32 %v247_v24, %v222_v37 }
  0x82   : > { %v256_v3 = vmul.f32 %v248_v25, %v222_v37  ;;  %v257_v4 = vmul.f32 %v249_v26, %v222_v37  ;;  %v258_v5 = vmul.f32 %v250_v27, %v222_v37  ;;  %v259_v6 = vmul.f32 %v251_v28, %v222_v37 }
  0x83   : > { %v332_v7 = vmul.f32 %v324_v46, %v306_v50  ;;  %v333_v8 = vmul.f32 %v325_v47, %v306_v50  ;;  %v334_v9 = vmul.f32 %v326_v48, %v306_v50  ;;  %v335_v10 = vmul.f32 %v327_v49, %v306_v50 }
  0x84   : > { %v336_v12 = vmul.f32 %v328_v59, %v306_v50  ;;  %v337_v13 = vmul.f32 %v329_v60, %v306_v50  ;;  %v338_v14 = vmul.f32 %v330_v61, %v306_v50  ;;  %v339_v15 = vmul.f32 %v331_v62, %v306_v50 }
  0x89   : > { %v262_v11 = vpop.permute.xlu0 %261  ;;  %v352_v32 = vpop.permute.xlu1 %351 }
  0x8a   : > { %v288_v16 = vmul.f32 %v280_v51, %v262_v11  ;;  %v289_v17 = vmul.f32 %v281_v52, %v262_v11  ;;  %v290_v18 = vmul.f32 %v282_v53, %v262_v11  ;;  %v291_v19 = vmul.f32 %v283_v54, %v262_v11 }
  0x8b   : > { %v292_v20 = vmul.f32 %v284_v55, %v262_v11  ;;  %v293_v21 = vmul.f32 %v285_v56, %v262_v11  ;;  %v294_v22 = vmul.f32 %v286_v57, %v262_v11  ;;  %v295_v23 = vmul.f32 %v287_v58, %v262_v11 }
  0x8c   : > { %v296_v24 = vadd.f32 %v288_v16, %v252_v63  ;;  %v297_v25 = vadd.f32 %v289_v17, %v253_v0  ;;  %v298_v26 = vadd.f32 %v290_v18, %v254_v1  ;;  %v299_v27 = vadd.f32 %v291_v19, %v255_v2 }
  0x8d   : > { %v300_v28 = vadd.f32 %v292_v20, %v256_v3  ;;  %v301_v29 = vadd.f32 %v293_v21, %v257_v4  ;;  %v302_v30 = vadd.f32 %v294_v22, %v258_v5  ;;  %v303_v31 = vadd.f32 %v295_v23, %v259_v6 }
  0x8e   : > { %v340_v33 = vadd.f32 %v332_v7, %v296_v24  ;;  %v341_v34 = vadd.f32 %v333_v8, %v297_v25  ;;  %v342_v35 = vadd.f32 %v334_v9, %v298_v26  ;;  %v343_v36 = vadd.f32 %v335_v10, %v299_v27 }
  0x8f   : > { %v344_v37 = vadd.f32 %v336_v12, %v300_v28  ;;  %v345_v38 = vadd.f32 %v337_v13, %v301_v29  ;;  %v346_v39 = vadd.f32 %v338_v14, %v302_v30  ;;  %v347_v40 = vadd.f32 %v339_v15, %v303_v31 }
  0x90   : > { %v355_v41 = vadd.f32 %v352_v32, %v341_v34  ;;  %v357_v42 = vadd.f32 %v352_v32, %v343_v36  ;;  %v354_v45 = vadd.f32 %v352_v32, %v340_v33  ;;  %v356_v46 = vadd.f32 %v352_v32, %v342_v35 }
  0x91   : > { %v359_v43 = vadd.f32 %v352_v32, %v345_v38  ;;  %v361_v44 = vadd.f32 %v352_v32, %v347_v40  ;;  %v358_v49 = vadd.f32 %v352_v32, %v344_v37  ;;  %v360_v50 = vadd.f32 %v352_v32, %v346_v39 }
  0x92   : > { %v370_v47 = vrot.slane %v355_v41, 4  ;;  %v371_v48 = vrot.slane %v357_v42, 4 }
  0x93   : > { %v372_v51 = vrot.slane %v359_v43, 4  ;;  %v373_v52 = vrot.slane %v361_v44, 4 }
  0x94   : > { %v375_v53 = vsel %vm374_vm0, %v354_v45, %v370_v47  ;;  %v376_v54 = vsel %vm374_vm0, %v356_v46, %v371_v48 }
  0x95   : > { %v377_v55 = vsel %vm374_vm0, %v358_v49, %v372_v51  ;;  %v378_v56 = vsel %vm374_vm0, %v360_v50, %v373_v52  ;;  %383 = vst [vmem:[%s208_s26] sm:$0x77] %v375_v53 }
  0x96   : > { %384 = vst [vmem:[%s208_s26 + $0x8] sm:$0x77] %v376_v54 }
  0x97   : > { %385 = vst [vmem:[%s208_s26 + $0x10] sm:$0x77] %v377_v55 }
  0x98   : > { %386 = vst [vmem:[%s208_s26 + $0x18] sm:$0x77] %v378_v56 }
  0x99 PF: > { %s13_s14 = sadd.s32 1, %s541_s14   ;;  %s616_s12 = smov %s537_s13 }
  0x9a   : > { %p10_p5 = scmp.ge.s32.totalorder %s13_s14, 4   ;;  %s617_s13 = smov %s619_s15 }
  0x9c   :  { %12 = sbr.rel (!%p10_p5) target bundleno = 2 (0x2), region = 62 }

// kernel: run_model.2
= control target key start
LH: loop header
LB: loop body
LE: loop exit
PB: predicated region body
PF: predicated region fallthrough
CT: control target
= control target key end

     0   :  { %s635_s6 = smov 0   ;;  %s637_s7 = smov 0   ;;  %s764_s0 = inlined_call_operand.vmem [shape: s32[2,3,1024], index: 0, kind: input, shape index: {}]   ;;  %s765_s1 = inlined_call_operand.vmem [shape: f32[2,3,4], index: 1, kind: output, shape index: {}]  }
   0x1   :  { %s639_s8 = smov 0  }
   0x2 LB: > { %s23_s9 = sadd.s32 1, %s618_s7  ;;  %p564_p0 = scmp.ge.s32.totalorder %s622_s8, 1  ;;  %s622_s8 = sphi %s639_s8, %s11_s8   ;;  %s618_s7 = sphi %s637_s7, %s767_s7   ;;  %s614_s6 = sphi %s635_s6, %s766_s6  }
   0x3   : > { %p25_p1 = scmp.ge.s32.totalorder %s23_s9, 2  ;;  %p106_p2 = scmp.lt.s32.totalorder %s622_s8, 3 }
   0x5   : > { %s769_s9 = smov (%p25_p1, %s23_s9), 0  ;;  %p107_p3 = pnand %p564_p0, %p106_p2 }
   0x6   : > { %p130_p4 = scmp.lt.s32.totalorder (!%p107_p3), %s614_s6, 1 }
   0x7   : > { %110 = sbr.rel (%p107_p3) target bundleno = 206 (0xce), region = 24 }
   0xc   : > { %s771_s6 = smov (!%p130_p4, %s614_s6), 1  ;;  %vm201_vm0 = vcmask 1043456   ;;  %vm241_vm1 = vcmask 1042432   ;;  %vm147_vm2 = vcmask 26624   ;;  %vm484_vm3 = vcmask 7168  }
   0xd   : > { %s574_s10 = sshll.u32 %s771_s6, 5  ;;  %s567_s14 = sshll.u32 %s771_s6, 2  ;;  %vm486_vm4 = vcmask 15360   ;;  %vm488_vm5 = vcmask 23552  }
   0xe   : > { %s137_s13 = scalar_lea.vmem %s764_s0, %s574_s10  ;;  %s142_s17 = scalar_lea.vmem %s765_s1, %s567_s14 }
   0xf   : > { %v149_v0 = vld [vmem:[%s137_s13] sm:$0x77]  ;;  %v150_v1 = vld [vmem:[%s137_s13 + $0x8] sm:$0x77]  ;;  %v151_v2 = vld [vmem:[%s137_s13 + $0x10] sm:$0x77] }
  0x10   : > { %v152_v3 = vld [vmem:[%s137_s13 + $0x18] sm:$0x77]  ;;  %v153_v4 = vcvt.s32.f32 %v149_v0  ;;  %v154_v5 = vcvt.s32.f32 %v150_v1  ;;  %v155_v6 = vcvt.s32.f32 %v151_v2 }
  0x11   : > { %v156_v7 = vcvt.s32.f32 %v152_v3 }
  0x12   : > { %v659_v8 = vadd.f32 -128.0, %v153_v4  ;;  %v661_v9 = vadd.f32 -128.0, %v154_v5  ;;  %v663_v10 = vadd.f32 -128.0, %v155_v6 }
  0x13   : > { %v665_v11 = vadd.f32 -128.0, %v156_v7 }
  0x14   : > { %v165_v12 = vperm.slane %v659_v8, 0  ;;  %v166_v13 = vperm.slane %v659_v8, 4  ;;  %v167_v14 = vperm.slane %v661_v9, 0  ;;  %v168_v15 = vperm.slane %v661_v9, 4 }
  0x15   : > { %v169_v16 = vperm.slane %v663_v10, 0  ;;  %v170_v17 = vperm.slane %v663_v10, 4  ;;  %v171_v18 = vperm.slane %v665_v11, 0  ;;  %v172_v19 = vperm.slane %v665_v11, 4 }
  0x16   : > { %v181_v20 = vperm.slane %v165_v12, 0  ;;  %v182_v21 = vperm.slane %v166_v13, 0  ;;  %v183_v22 = vperm.slane %v167_v14, 0  ;;  %v184_v23 = vperm.slane %v168_v15, 0 }
  0x17   : > { %v185_v24 = vperm.slane %v169_v16, 0  ;;  %v186_v25 = vperm.slane %v170_v17, 0  ;;  %v187_v26 = vperm.slane %v171_v18, 0  ;;  %v188_v27 = vperm.slane %v172_v19, 0 }
  0x18   : > { %v197_v28 = vrot.slane %v182_v21, 4  ;;  %v198_v29 = vrot.slane %v184_v23, 4  ;;  %v259_v30 = vperm.slane %v659_v8, 1  ;;  %v260_v31 = vperm.slane %v659_v8, 5 }
  0x19   : > { %v199_v32 = vrot.slane %v186_v25, 4  ;;  %v200_v33 = vrot.slane %v188_v27, 4  ;;  %v261_v34 = vperm.slane %v661_v9, 1  ;;  %v262_v35 = vperm.slane %v661_v9, 5 }
  0x1a   : > { %v202_v36 = vsel %vm201_vm0, %v181_v20, %v197_v28  ;;  %v203_v37 = vsel %vm201_vm0, %v183_v22, %v198_v29  ;;  %v263_v38 = vperm.slane %v663_v10, 1  ;;  %v264_v39 = vperm.slane %v663_v10, 5 }
  0x1b   : > { %v204_v40 = vsel %vm201_vm0, %v185_v24, %v199_v32  ;;  %v205_v41 = vsel %vm201_vm0, %v187_v26, %v200_v33  ;;  %v210_v42 = vmul.f32 %v659_v8, %v202_v36  ;;  %v211_v43 = vmul.f32 %v661_v9, %v203_v37 }
  0x1c   : > { %v212_v44 = vmul.f32 %v663_v10, %v204_v40  ;;  %v213_v45 = vmul.f32 %v665_v11, %v205_v41  ;;  %v265_v46 = vperm.slane %v665_v11, 1  ;;  %v266_v47 = vperm.slane %v665_v11, 5 }
  0x1d   : > { %218 = vst [vmem:[#allocation1] ss:$2 sm:$0xff] %v210_v42  ;;  %v275_v48 = vperm.slane %v259_v30, 1  ;;  %v276_v49 = vperm.slane %v260_v31, 1  ;;  %v278_v50 = vperm.slane %v262_v35, 1  ;;  %v277_v51 = vperm.slane %v261_v34, 1 }
  0x1e   : > { %220 = vst [vmem:[#allocation1 + $0x10] ss:$2 sm:$0xff] %v211_v43  ;;  %v280_v52 = vperm.slane %v264_v39, 1  ;;  %v282_v53 = vperm.slane %v266_v47, 1  ;;  %v279_v54 = vperm.slane %v263_v38, 1  ;;  %v281_v57 = vperm.slane %v265_v46, 1 }
  0x1f   : > { %222 = vst [vmem:[#allocation1 + $0x20] ss:$2 sm:$0xff] %v212_v44  ;;  %v291_v55 = vrot.slane %v276_v49, 4  ;;  %v292_v56 = vrot.slane %v278_v50, 4  ;;  %v351_v61 = vperm.slane %v659_v8, 2  ;;  %v352_v63 = vperm.slane %v659_v8, 6 }
  0x20   : > { %224 = vst [vmem:[#allocation1 + $0x30] ss:$2 sm:$0xff] %v213_v45  ;;  %v293_v58 = vrot.slane %v280_v52, 4  ;;  %v294_v59 = vrot.slane %v282_v53, 4  ;;  %v353_v0 = vperm.slane %v661_v9, 2  ;;  %v354_v1 = vperm.slane %v661_v9, 6 }
  0x21   : > { %v295_v60 = vsel %vm201_vm0, %v275_v48, %v291_v55  ;;  %v296_v62 = vsel %vm201_vm0, %v277_v51, %v292_v56  ;;  %v355_v3 = vperm.slane %v663_v10, 2  ;;  %v356_v4 = vperm.slane %v663_v10, 6 }
  0x22   : > { %v297_v2 = vsel %vm201_vm0, %v279_v54, %v293_v58  ;;  %v357_v5 = vperm.slane %v665_v11, 2  ;;  %v298_v12 = vsel %vm201_vm0, %v281_v57, %v294_v59  ;;  %v303_v13 = vmul.f32 %v659_v8, %v295_v60 }
  0x23   : > { %v304_v16 = vmul.f32 %v661_v9, %v296_v62  ;;  %v305_v19 = vmul.f32 %v663_v10, %v297_v2  ;;  %v306_v22 = vmul.f32 %v665_v11, %v298_v12  ;;  %v358_v26 = vperm.slane %v665_v11, 6 }
  0x24   : > { %v225_v6 = vld.sshfl [vmem:[#allocation1] sm:$0xff pattern:$0x75316420]  ;;  %v226_v7 = vld.sshfl [vmem:[#allocation1 + $0x8] sm:$0xff pattern:$0x75316420] }
  0x25   : > { %v227_v14 = vld.sshfl [vmem:[#allocation1 + $0x10] sm:$0xff pattern:$0x75316420]  ;;  %v228_v15 = vld.sshfl [vmem:[#allocation1 + $0x18] sm:$0xff pattern:$0x75316420] }
  0x26   : > { %v229_v17 = vld.sshfl [vmem:[#allocation1 + $0x20] sm:$0xff pattern:$0x75316420]  ;;  %v230_v18 = vld.sshfl [vmem:[#allocation1 + $0x28] sm:$0xff pattern:$0x75316420] }
  0x27   : > { %v231_v20 = vld.sshfl [vmem:[#allocation1 + $0x30] sm:$0xff pattern:$0x75316420]  ;;  %v232_v21 = vld.sshfl [vmem:[#allocation1 + $0x38] sm:$0xff pattern:$0x75316420] }
  0x28   : > { %v242_v23 = vsel %vm241_vm1, %v225_v6, 0.0  ;;  %v243_v24 = vsel %vm241_vm1, %v226_v7, 0.0  ;;  %v245_v25 = vsel %vm241_vm1, %v227_v14, 0.0  ;;  %311 = vst [vmem:[#allocation1] ss:$2 sm:$0xff] %v303_v13  ;;  %v247_v28 = vsel %vm241_vm1, %v228_v15, 0.0 }
  0x29   : > { %v244_v27 = vadd.f32 %v243_v24, %v242_v23  ;;  %313 = vst [vmem:[#allocation1 + $0x10] ss:$2 sm:$0xff] %v304_v16  ;;  %v367_v29 = vperm.slane %v351_v61, 2  ;;  %v368_v30 = vperm.slane %v352_v63, 2  ;;  %v369_v31 = vperm.slane %v353_v0, 2 }
  0x2a   : > { %315 = vst [vmem:[#allocation1 + $0x20] ss:$2 sm:$0xff] %v305_v19  ;;  %v370_v33 = vperm.slane %v354_v1, 2  ;;  %v371_v34 = vperm.slane %v355_v3, 2  ;;  %v372_v35 = vperm.slane %v356_v4, 2  ;;  %v249_v36 = vsel %vm241_vm1, %v229_v17, 0.0 }
  0x2b   : > { %v246_v32 = vadd.f32 %v245_v25, %v244_v27  ;;  %317 = vst [vmem:[#allocation1 + $0x30] ss:$2 sm:$0xff] %v306_v22  ;;  %v373_v37 = vperm.slane %v357_v5, 2  ;;  %v374_v38 = vperm.slane %v358_v26, 2  ;;  %v383_v39 = vrot.slane %v368_v30, 4 }
  0x2c   : > { %v251_v41 = vsel %vm241_vm1, %v230_v18, 0.0  ;;  %v384_v42 = vrot.slane %v370_v33, 4  ;;  %v385_v43 = vrot.slane %v372_v35, 4  ;;  %v253_v44 = vsel %vm241_vm1, %v231_v20, 0.0 }
  0x2d   : > { %v248_v40 = vadd.f32 %v247_v28, %v246_v32  ;;  %v255_v45 = vsel %vm241_vm1, %v232_v21, 0.0  ;;  %v386_v46 = vrot.slane %v374_v38, 4  ;;  %v387_v47 = vsel %vm201_vm0, %v367_v29, %v383_v39 }
  0x2e   : > { %v388_v51 = vsel %vm201_vm0, %v369_v31, %v384_v42  ;;  %v389_v52 = vsel %vm201_vm0, %v371_v34, %v385_v43  ;;  %v395_v53 = vmul.f32 %v659_v8, %v387_v47 }
  0x2f   : > { %v250_v48 = vadd.f32 %v249_v36, %v248_v40  ;;  %v318_v49 = vld.sshfl [vmem:[#allocation1] sm:$0xff pattern:$0x75316420]  ;;  %v319_v50 = vld.sshfl [vmem:[#allocation1 + $0x8] sm:$0xff pattern:$0x75316420]  ;;  %v390_v56 = vsel %vm201_vm0, %v373_v37, %v386_v46  ;;  %v396_v57 = vmul.f32 %v661_v9, %v388_v51  ;;  %v397_v61 = vmul.f32 %v663_v10, %v389_v52 }
  0x30   : > { %v320_v54 = vld.sshfl [vmem:[#allocation1 + $0x10] sm:$0xff pattern:$0x75316420]  ;;  %v321_v55 = vld.sshfl [vmem:[#allocation1 + $0x18] sm:$0xff pattern:$0x75316420]  ;;  %v398_v0 = vmul.f32 %v665_v11, %v390_v56 }
  0x31   : > { %v252_v58 = vadd.f32 %v251_v41, %v250_v48  ;;  %v322_v59 = vld.sshfl [vmem:[#allocation1 + $0x20] sm:$0xff pattern:$0x75316420]  ;;  %v323_v60 = vld.sshfl [vmem:[#allocation1 + $0x28] sm:$0xff pattern:$0x75316420] }
  0x32   : > { %v324_v62 = vld.sshfl [vmem:[#allocation1 + $0x30] sm:$0xff pattern:$0x75316420]  ;;  %v325_v63 = vld.sshfl [vmem:[#allocation1 + $0x38] sm:$0xff pattern:$0x75316420] }
  0x33   : > { %v254_v1 = vadd.f32 %v253_v44, %v252_v58  ;;  %v334_v2 = vsel %vm241_vm1, %v318_v49, 0.0  ;;  %v335_v3 = vsel %vm241_vm1, %v319_v50, 0.0  ;;  %v337_v4 = vsel %vm241_vm1, %v320_v54, 0.0  ;;  %403 = vst [vmem:[#allocation1] ss:$2 sm:$0xff] %v395_v53 }
  0x34   : > { %v336_v5 = vadd.f32 %v335_v3, %v334_v2  ;;  %405 = vst [vmem:[#allocation1 + $0x10] ss:$2 sm:$0xff] %v396_v57  ;;  %v339_v7 = vsel %vm241_vm1, %v321_v55, 0.0  ;;  %v341_v13 = vsel %vm241_vm1, %v322_v59, 0.0  ;;  %v343_v15 = vsel %vm241_vm1, %v323_v60, 0.0 }
  0x35   : > { %v256_v6 = vadd.f32 %v255_v45, %v254_v1  ;;  %407 = vst [vmem:[#allocation1 + $0x20] ss:$2 sm:$0xff] %v397_v61  ;;  %v345_v16 = vsel %vm241_vm1, %v324_v62, 0.0  ;;  %v347_v17 = vsel %vm241_vm1, %v325_v63, 0.0 }
  0x36   : > { %v338_v12 = vadd.f32 %v337_v4, %v336_v5  ;;  %409 = vst [vmem:[#allocation1 + $0x30] ss:$2 sm:$0xff] %v398_v0  ;;  %v624_v0 = vmov 0.0  }
  0x37   : > { %257 = vadd.xlane.f32.xlu0 %v256_v6  ;;  %148 = vst.msk [vmem:[%s142_s17] sm:$0x7] %vm147_vm2, %v624_v0 }
  0x38   : > { %v340_v14 = vadd.f32 %v339_v7, %v338_v12 }
  0x3a   : > { %v342_v18 = vadd.f32 %v341_v13, %v340_v14  ;;  %v410_v19 = vld.sshfl [vmem:[#allocation1] sm:$0xff pattern:$0x75316420]  ;;  %v411_v20 = vld.sshfl [vmem:[#allocation1 + $0x8] sm:$0xff pattern:$0x75316420] }
  0x3b   : > { %v412_v21 = vld.sshfl [vmem:[#allocation1 + $0x10] sm:$0xff pattern:$0x75316420]  ;;  %v413_v22 = vld.sshfl [vmem:[#allocation1 + $0x18] sm:$0xff pattern:$0x75316420] }
  0x3c   : > { %v344_v23 = vadd.f32 %v343_v15, %v342_v18  ;;  %v414_v24 = vld.sshfl [vmem:[#allocation1 + $0x20] sm:$0xff pattern:$0x75316420]  ;;  %v415_v25 = vld.sshfl [vmem:[#allocation1 + $0x28] sm:$0xff pattern:$0x75316420] }
  0x3d   : > { %v416_v26 = vld.sshfl [vmem:[#allocation1 + $0x30] sm:$0xff pattern:$0x75316420]  ;;  %v417_v27 = vld.sshfl [vmem:[#allocation1 + $0x38] sm:$0xff pattern:$0x75316420] }
  0x3e   : > { %v346_v28 = vadd.f32 %v345_v16, %v344_v23  ;;  %v426_v29 = vsel %vm241_vm1, %v410_v19, 0.0  ;;  %v427_v30 = vsel %vm241_vm1, %v411_v20, 0.0  ;;  %v429_v31 = vsel %vm241_vm1, %v412_v21, 0.0  ;;  %443 = vst [vmem:[#allocation1] ss:$2 sm:$0xff] %v659_v8 }
  0x3f   : > { %v428_v32 = vadd.f32 %v427_v30, %v426_v29  ;;  %445 = vst [vmem:[#allocation1 + $0x10] ss:$2 sm:$0xff] %v661_v9  ;;  %v431_v34 = vsel %vm241_vm1, %v413_v22, 0.0  ;;  %v433_v36 = vsel %vm241_vm1, %v414_v24, 0.0  ;;  %v435_v38 = vsel %vm241_vm1, %v415_v25, 0.0 }
  0x40   : > { %v348_v33 = vadd.f32 %v347_v17, %v346_v28  ;;  %447 = vst [vmem:[#allocation1 + $0x20] ss:$2 sm:$0xff] %v663_v10  ;;  %v437_v8 = vsel %vm241_vm1, %v416_v26, 0.0  ;;  %v439_v43 = vsel %vm241_vm1, %v417_v27, 0.0  ;;  %v483_v5 = vld [vmem:[%s142_s17] sm:$0x7] }
  0x41   : > { %v430_v35 = vadd.f32 %v429_v31, %v428_v32  ;;  %449 = vst [vmem:[#allocation1 + $0x30] ss:$2 sm:$0xff] %v665_v11 }
  0x42   : > { %349 = vadd.xlane.f32.xlu0 %v348_v33 }
  0x43   : > { %v432_v37 = vadd.f32 %v431_v34, %v430_v35 }
  0x45   : > { %v434_v39 = vadd.f32 %v433_v36, %v432_v37  ;;  %v450_v40 = vld.sshfl [vmem:[#allocation1] sm:$0xff pattern:$0x75316420]  ;;  %v451_v41 = vld.sshfl [vmem:[#allocation1 + $0x8] sm:$0xff pattern:$0x75316420] }
  0x46   : > { %v452_v9 = vld.sshfl [vmem:[#allocation1 + $0x10] sm:$0xff pattern:$0x75316420]  ;;  %v453_v44 = vld.sshfl [vmem:[#allocation1 + $0x18] sm:$0xff pattern:$0x75316420] }
  0x47   : > { %v436_v42 = vadd.f32 %v435_v38, %v434_v39  ;;  %v466_v45 = vsel %vm241_vm1, %v450_v40, 0.0  ;;  %v467_v11 = vsel %vm241_vm1, %v451_v41, 0.0  ;;  %v469_v46 = vsel %vm241_vm1, %v452_v9, 0.0  ;;  %v454_v47 = vld.sshfl [vmem:[#allocation1 + $0x20] sm:$0xff pattern:$0x75316420] }
  0x48   : > { %v468_v48 = vadd.f32 %v467_v11, %v466_v45  ;;  %v471_v50 = vsel %vm241_vm1, %v453_v44, 0.0  ;;  %v455_v51 = vld.sshfl [vmem:[#allocation1 + $0x28] sm:$0xff pattern:$0x75316420]  ;;  %v473_v53 = vsel %vm241_vm1, %v454_v47, 0.0 }
  0x49   : > { %v438_v10 = vadd.f32 %v437_v8, %v436_v42  ;;  %v456_v54 = vld.sshfl [vmem:[#allocation1 + $0x30] sm:$0xff pattern:$0x75316420]  ;;  %v475_v56 = vsel %vm241_vm1, %v455_v51, 0.0 }
  0x4a   : > { %v470_v52 = vadd.f32 %v469_v46, %v468_v48  ;;  %v457_v57 = vld.sshfl [vmem:[#allocation1 + $0x38] sm:$0xff pattern:$0x75316420]  ;;  %v477_v59 = vsel %vm241_vm1, %v456_v54, 0.0 }
  0x4b   : > { %v440_v49 = vadd.f32 %v439_v43, %v438_v10  ;;  %v479_v61 = vsel %vm241_vm1, %v457_v57, 0.0 }
  0x4c   : > { %v472_v55 = vadd.f32 %v471_v50, %v470_v52 }
  0x4d   : > { %441 = vadd.xlane.f32.xlu1 %v440_v49 }
  0x4e   : > { %v474_v58 = vadd.f32 %v473_v53, %v472_v55 }
  0x50   : > { %v476_v60 = vadd.f32 %v475_v56, %v474_v58 }
  0x52   : > { %v478_v62 = vadd.f32 %v477_v59, %v476_v60 }
  0x54   : > { %v480_v63 = vadd.f32 %v479_v61, %v478_v62 }
  0x56   : > { %481 = vadd.xlane.f32.xlu1 %v480_v63 }
  0xaa   : > { %v258_v1 = vpop.xlane.xlu0 %257 }
  0xb5   : > { %v350_v3 = vpop.xlane.xlu0 %349 }
  0xb6   : > { %v485_v4 = vsel %vm484_vm3, %v258_v1, %v350_v3 }
  0xc0   : > { %v442_v2 = vpop.xlane.xlu1 %441 }
  0xc1   : > { %v487_v6 = vsel %vm486_vm4, %v485_v4, %v442_v2 }
  0xc9   : > { %v482_v7 = vpop.xlane.xlu1 %481 }
  0xca   : > { %v489_v12 = vsel %vm488_vm5, %v487_v6, %v482_v7 }
  0xcb   : > { %v490_v13 = vadd.f32 %v489_v12, %v483_v5 }
  0xcd   : > { %492 = vst.msk [vmem:[%s142_s17] sm:$0x7] %vm147_vm2, %v490_v13 }
  0xce PF: > { %s11_s8 = sadd.s32 1, %s622_s8   ;;  %s766_s6 = smov %s618_s7 }
  0xcf   : > { %p8_p5 = scmp.ge.s32.totalorder %s11_s8, 4   ;;  %s767_s7 = smov %s769_s9 }
  0xd1   :  { %10 = sbr.rel (!%p8_p5) target bundleno = 2 (0x2), region = 70 }

</bundles_post_ra>
